<compile_context>
chip_gen: v5e
topology: v5e:2x2
jax: 0.10.0
libtpu: 0.0.40
codegen_flags: <defaults>
</compile_context>

<pallas_src>
import functools

import jax
import jax.numpy as jnp
from jax.experimental import pallas as pl
from jax.experimental.pallas import tpu as pltpu


def _round_up(x, m):
    return (x + m - 1) // m * m


def _cdiv(a, b):
    return (a + b - 1) // b


def _padded_tile_bytes(rows, cols, dtype_bytes=4):
    """VMEM footprint of one f32 (rows, cols) buffer after (8, 128) tiling."""
    return _round_up(max(rows, 1), 8) * _round_up(max(cols, 1), 128) * dtype_bytes


def _mlp_value_kernel(x_ref, w1t_ref, b1_ref, w2t_ref, b2_ref, w3_ref, b3_ref,
                      o_ref):
    """Fused 3-layer MLP on one batch tile, feature-major activations.

    x_ref : (tb, S)  batch tile (batch on sublanes, as laid out in HBM)
    w1t   : (H, S)   W1^T          b1 : (H, 1)
    w2t   : (H, H)   W2^T          b2 : (H, 1)
    w3    : (1, H)   W3^T          b3 : (1, 1)
    o_ref : (1, tb)  lane-dense row of values (batch on the lane axis)
    """
    x = x_ref[...]                                                   # (tb, S)

    # h1^T = W1^T @ x^T -> (H, tb); q@k^T-style contraction over S, so no
    # materialized transpose of the x tile is required.
    h1 = jax.lax.dot_general(
        w1t_ref[...], x,
        dimension_numbers=(((1,), (1,)), ((), ())),
        preferred_element_type=jnp.float32)                          # (H, tb)
    h1 = jnp.maximum(h1 + b1_ref[...], 0.0)                          # ReLU

    # h2^T = W2^T @ h1^T -> (H, tb)
    h2 = jnp.dot(w2t_ref[...], h1, preferred_element_type=jnp.float32)
    h2 = jnp.maximum(h2 + b2_ref[...], 0.0)                          # ReLU

    # v^T = W3^T @ h2^T -> (1, tb); already lane-dense for the store.
    row = jnp.dot(w3_ref[...], h2, preferred_element_type=jnp.float32)
    o_ref[...] = (row + b3_ref[...]).astype(o_ref.dtype)


@functools.partial(jax.jit, static_argnames=("block_b",))
def value_function_forward(state, params, block_b=4096):
    """Pallas-backed ValueFunction forward.

    state:   (B, state_dim) float32 (any B; padded internally)
    params:  dict with w1 (S,H), b1 (1,H), w2 (H,H), b2 (1,H), w3 (H,1), b3 (1,1)
    block_b: max batch tile size; must be a multiple of 128.
    returns: (B,) float32
    """
    B, S = state.shape
    H = params["w1"].shape[1]
    assert block_b > 0 and block_b % 128 == 0, "block_b must be a multiple of 128"

    # --- batch tiling -------------------------------------------------------
    SMALL_SINGLE_TILE = 256
    b_pad8 = _round_up(B, 8)
    if b_pad8 <= SMALL_SINGLE_TILE:
        # Tiny batch: one sublane-padded tile.
        tb = b_pad8
        num_tiles = 1
    else:
        # Balanced, 128-aligned tiles; >= 2 tiles so both v7x TCs get work and
        # padding waste is < 128 rows per tile (no pad-to-2*block_b blowup).
        num_tiles = max(2, _cdiv(B, block_b))
        tb = min(block_b, _round_up(_cdiv(B, num_tiles), 128))
        num_tiles = _cdiv(B, tb)
    Bp = num_tiles * tb
    if Bp != B:
        state = jnp.pad(state, ((0, Bp - B), (0, 0)))

    # --- feature-major parameter views (tiny, fused by XLA) -----------------
    w1t = params["w1"].T                  # (H, S)
    b1c = params["b1"].reshape(H, 1)      # (H, 1)
    w2t = params["w2"].T                  # (H, H)
    b2c = params["b2"].reshape(H, 1)      # (H, 1)
    w3r = params["w3"].reshape(1, H)      # (1, H) == W3^T
    b3s = params["b3"].reshape(1, 1)      # (1, 1)

    # --- VMEM budget (accounts for (8,128) lane padding of the (tb,S) tile) --
    vmem_est = (
        2 * _padded_tile_bytes(tb, S)          # double-buffered x tile
        + 2 * _padded_tile_bytes(1, tb)        # double-buffered output row
        + 6 * _padded_tile_bytes(H, tb)        # h1/h2 + matmul temporaries
        + 2 * (_padded_tile_bytes(H, S) + _padded_tile_bytes(H, H)
               + 2 * _padded_tile_bytes(H, 1) + _padded_tile_bytes(1, H)
               + _padded_tile_bytes(1, 1))     # resident weights / biases
        + (2 << 20)                            # slack
    )
    vmem_limit = int(min(max(2 * vmem_est, 32 << 20), 48 << 20))

    # --- scheduler hint ------------------------------------------------------
    flops = 2 * B * (S * H + H * H + H)
    bytes_accessed = 4 * (B * S + B + S * H + H * H + 2 * H + H + 1)
    cost = pl.CostEstimate(flops=flops, transcendentals=0,
                           bytes_accessed=bytes_accessed)

    out = pl.pallas_call(
        _mlp_value_kernel,
        out_shape=jax.ShapeDtypeStruct((1, Bp), jnp.float32),
        grid_spec=pltpu.PrefetchScalarGridSpec(
            num_scalar_prefetch=0,
            grid=(num_tiles,),
            in_specs=[
                pl.BlockSpec((tb, S), lambda i: (i, 0)),   # state tile
                pl.BlockSpec((H, S), lambda i: (0, 0)),    # W1^T (resident)
                pl.BlockSpec((H, 1), lambda i: (0, 0)),    # b1
                pl.BlockSpec((H, H), lambda i: (0, 0)),    # W2^T
                pl.BlockSpec((H, 1), lambda i: (0, 0)),    # b2
                pl.BlockSpec((1, H), lambda i: (0, 0)),    # W3^T row
                pl.BlockSpec((1, 1), lambda i: (0, 0)),    # b3
            ],
            out_specs=pl.BlockSpec((1, tb), lambda i: (0, i)),  # lane-dense row
        ),
        compiler_params=pltpu.CompilerParams(
            dimension_semantics=("parallel",),
            vmem_limit_bytes=vmem_limit,
        ),
        cost_estimate=cost,
    )(state, w1t, b1c, w2t, b2c, w3r, b3s)

    return out[0, :B]  # squeeze_output=True -> (B,)


def init_value_function_params(key, state_dim, hidden_dim):
    """Deterministic PyTorch-style Linear init: U(-1/sqrt(fan_in), 1/sqrt(fan_in))."""
    dims = [state_dim, hidden_dim, hidden_dim, 1]
    params = {}
    keys = jax.random.split(key, 2 * (len(dims) - 1))
    for li in range(len(dims) - 1):
        fan_in, fan_out = dims[li], dims[li + 1]
        bound = 1.0 / jnp.sqrt(jnp.float32(fan_in))
        w = jax.random.uniform(keys[2 * li], (fan_in, fan_out),
                               minval=-bound, maxval=bound, dtype=jnp.float32)
        b = jax.random.uniform(keys[2 * li + 1], (1, fan_out),
                               minval=-bound, maxval=bound, dtype=jnp.float32)
        params[f"w{li + 1}"] = w
        params[f"b{li + 1}"] = b
    return params


def _reference_forward(state, params):
    """Pure-JAX reference for correctness checking (true f32 matmuls)."""
    hp = jax.lax.Precision.HIGHEST
    h = jnp.maximum(jnp.dot(state, params["w1"], precision=hp) + params["b1"], 0.0)
    h = jnp.maximum(jnp.dot(h, params["w2"], precision=hp) + params["b2"], 0.0)
    out = jnp.dot(h, params["w3"], precision=hp) + params["b3"]
    return out[:, 0]


if __name__ == "__main__":
    key = jax.random.PRNGKey(0)
    k_param, k_s1, k_s2, k_s3 = jax.random.split(key, 4)

    # Small shapes consistent with ValueFunction(state_dim, hidden_dim, n_hidden=2)
    state_dim = 16
    hidden_dim = 32
    params = init_value_function_params(k_param, state_dim, hidden_dim)

    # Case 1: tiny batch (single-tile path).
    s1 = jax.random.normal(k_s1, (8, state_dim), dtype=jnp.float32)
    v1 = jax.block_until_ready(value_function_forward(s1, params))
    r1 = _reference_forward(s1, params)
    assert v1.shape == (8,)
    assert jnp.allclose(v1, r1, atol=1e-4, rtol=1e-4), (v1, r1)

    # Case 2: ragged batch with small block_b (multi-tile, 128-aligned tiles).
    s2 = jax.random.normal(k_s2, (300, state_dim), dtype=jnp.float32)
    v2 = jax.block_until_ready(value_function_forward(s2, params, block_b=128))
    r2 = _reference_forward(s2, params)
    assert v2.shape == (300,)
    assert jnp.allclose(v2, r2, atol=1e-4, rtol=1e-4), (v2, r2)

    # Case 3: mid-size batch with default block_b (balanced >=2-tile path).
    s3 = jax.random.normal(k_s3, (600, state_dim), dtype=jnp.float32)
    v3 = jax.block_until_ready(value_function_forward(s3, params))
    r3 = _reference_forward(s3, params)
    assert v3.shape == (600,)
    assert jnp.allclose(v3, r3, atol=1e-4, rtol=1e-4), (v3, r3)

    print("KERNEL_OK")
</pallas_src>

<mosaic_0001>
module attributes {stable_mosaic.version = 11 : i64} {
  func.func @_mlp_value_kernel(%arg0: i32, %arg1: memref<8x16xf32, #tpu.memory_space<vmem>>, %arg2: memref<32x16xf32, #tpu.memory_space<vmem>>, %arg3: memref<32x1xf32, #tpu.memory_space<vmem>>, %arg4: memref<32x32xf32, #tpu.memory_space<vmem>>, %arg5: memref<32x1xf32, #tpu.memory_space<vmem>>, %arg6: memref<1x32xf32, #tpu.memory_space<vmem>>, %arg7: memref<1x1xf32, #tpu.memory_space<vmem>>, %arg8: memref<1x8xf32, #tpu.memory_space<vmem>>) attributes {dimension_semantics = [#tpu.dimension_semantics<parallel>], iteration_bounds = array<i64: 1>, scalar_prefetch = 0 : i64, scratch_operands = 0 : i64, tpu.core_type = #tpu.core_type<tc>, window_params = [{transform_indices = @transform_0, window_bounds = array<i64: 8, 16>}, {pipeline_mode = #tpu.pipeline_mode<synchronous>, transform_indices = @transform_1, window_bounds = array<i64: 32, 16>}, {pipeline_mode = #tpu.pipeline_mode<synchronous>, transform_indices = @transform_2, window_bounds = array<i64: 32, 1>}, {pipeline_mode = #tpu.pipeline_mode<synchronous>, transform_indices = @transform_3, window_bounds = array<i64: 32, 32>}, {pipeline_mode = #tpu.pipeline_mode<synchronous>, transform_indices = @transform_4, window_bounds = array<i64: 32, 1>}, {pipeline_mode = #tpu.pipeline_mode<synchronous>, transform_indices = @transform_5, window_bounds = array<i64: 1, 32>}, {pipeline_mode = #tpu.pipeline_mode<synchronous>, transform_indices = @transform_6, window_bounds = array<i64: 1, 1>}, {transform_indices = @transform_7, window_bounds = array<i64: 1, 8>}]} {
    %c0 = arith.constant 0 : index
    %c0_0 = arith.constant 0 : index
    %0 = vector.load %arg1[%c0, %c0_0] : memref<8x16xf32, #tpu.memory_space<vmem>>, vector<8x16xf32>
    %c0_1 = arith.constant 0 : index
    %c0_2 = arith.constant 0 : index
    %1 = vector.load %arg2[%c0_1, %c0_2] : memref<32x16xf32, #tpu.memory_space<vmem>>, vector<32x16xf32>
    %cst = arith.constant dense<0.000000e+00> : vector<32x8xf32>
    %2 = tpu.matmul %1, %0, %cst {dimension_numbers = #tpu.dot_dimension_numbers<[1], [1], [0], [0], [0, 0, 1, 0], [], []>} : vector<32x16xf32>, vector<8x16xf32>, vector<32x8xf32> -> vector<32x8xf32>
    %c0_3 = arith.constant 0 : index
    %c0_4 = arith.constant 0 : index
    %3 = vector.load %arg3[%c0_3, %c0_4] : memref<32x1xf32, #tpu.memory_space<vmem>>, vector<32x1xf32>
    %4 = vector.broadcast %3 : vector<32x1xf32> to vector<32x8xf32>
    %5 = arith.addf %2, %4 : vector<32x8xf32>
    %cst_5 = arith.constant 0.000000e+00 : f32
    %6 = vector.broadcast %cst_5 : f32 to vector<32x8xf32>
    %7 = arith.maximumf %5, %6 : vector<32x8xf32>
    %c0_6 = arith.constant 0 : index
    %c0_7 = arith.constant 0 : index
    %8 = vector.load %arg4[%c0_6, %c0_7] : memref<32x32xf32, #tpu.memory_space<vmem>>, vector<32x32xf32>
    %cst_8 = arith.constant dense<0.000000e+00> : vector<32x8xf32>
    %9 = tpu.matmul %8, %7, %cst_8 {dimension_numbers = #tpu.dot_dimension_numbers<[1], [0], [0], [1], [0, 0, 1, 1], [], []>} : vector<32x32xf32>, vector<32x8xf32>, vector<32x8xf32> -> vector<32x8xf32>
    %c0_9 = arith.constant 0 : index
    %c0_10 = arith.constant 0 : index
    %10 = vector.load %arg5[%c0_9, %c0_10] : memref<32x1xf32, #tpu.memory_space<vmem>>, vector<32x1xf32>
    %11 = vector.broadcast %10 : vector<32x1xf32> to vector<32x8xf32>
    %12 = arith.addf %9, %11 : vector<32x8xf32>
    %cst_11 = arith.constant 0.000000e+00 : f32
    %13 = vector.broadcast %cst_11 : f32 to vector<32x8xf32>
    %14 = arith.maximumf %12, %13 : vector<32x8xf32>
    %c0_12 = arith.constant 0 : index
    %c0_13 = arith.constant 0 : index
    %15 = vector.load %arg6[%c0_12, %c0_13] : memref<1x32xf32, #tpu.memory_space<vmem>>, vector<1x32xf32>
    %cst_14 = arith.constant dense<0.000000e+00> : vector<1x8xf32>
    %16 = tpu.matmul %15, %14, %cst_14 {dimension_numbers = #tpu.dot_dimension_numbers<[1], [0], [0], [1], [0, 0, 1, 1], [], []>} : vector<1x32xf32>, vector<32x8xf32>, vector<1x8xf32> -> vector<1x8xf32>
    %c0_15 = arith.constant 0 : index
    %c0_16 = arith.constant 0 : index
    %17 = vector.load %arg7[%c0_15, %c0_16] : memref<1x1xf32, #tpu.memory_space<vmem>>, vector<1x1xf32>
    %18 = vector.broadcast %17 : vector<1x1xf32> to vector<1x8xf32>
    %19 = arith.addf %16, %18 : vector<1x8xf32>
    %c0_17 = arith.constant 0 : index
    %c0_18 = arith.constant 0 : index
    %20 = vector.load %arg8[%c0_17, %c0_18] : memref<1x8xf32, #tpu.memory_space<vmem>>, vector<1x8xf32>
    tpu.vector_store %arg8[%c0_17, %c0_18], %19 {strides = array<i32>} : memref<1x8xf32, #tpu.memory_space<vmem>>, vector<1x8xf32>,
    return
  }
  func.func @transform_0(%arg0: i32) -> (i32, i32) {
    %c0_i32 = arith.constant 0 : i32
    %c0_i32_0 = arith.constant 0 : i32
    return %arg0, %c0_i32 : i32, i32
  }
  func.func @transform_1(%arg0: i32) -> (i32, i32) {
    %c0_i32 = arith.constant 0 : i32
    %c0_i32_0 = arith.constant 0 : i32
    %c0_i32_1 = arith.constant 0 : i32
    return %c0_i32, %c0_i32_0 : i32, i32
  }
  func.func @transform_2(%arg0: i32) -> (i32, i32) {
    %c0_i32 = arith.constant 0 : i32
    %c0_i32_0 = arith.constant 0 : i32
    %c0_i32_1 = arith.constant 0 : i32
    return %c0_i32, %c0_i32_0 : i32, i32
  }
  func.func @transform_3(%arg0: i32) -> (i32, i32) {
    %c0_i32 = arith.constant 0 : i32
    %c0_i32_0 = arith.constant 0 : i32
    %c0_i32_1 = arith.constant 0 : i32
    return %c0_i32, %c0_i32_0 : i32, i32
  }
  func.func @transform_4(%arg0: i32) -> (i32, i32) {
    %c0_i32 = arith.constant 0 : i32
    %c0_i32_0 = arith.constant 0 : i32
    %c0_i32_1 = arith.constant 0 : i32
    return %c0_i32, %c0_i32_0 : i32, i32
  }
  func.func @transform_5(%arg0: i32) -> (i32, i32) {
    %c0_i32 = arith.constant 0 : i32
    %c0_i32_0 = arith.constant 0 : i32
    %c0_i32_1 = arith.constant 0 : i32
    return %c0_i32, %c0_i32_0 : i32, i32
  }
  func.func @transform_6(%arg0: i32) -> (i32, i32) {
    %c0_i32 = arith.constant 0 : i32
    %c0_i32_0 = arith.constant 0 : i32
    %c0_i32_1 = arith.constant 0 : i32
    return %c0_i32, %c0_i32_0 : i32, i32
  }
  func.func @transform_7(%arg0: i32) -> (i32, i32) {
    %c0_i32 = arith.constant 0 : i32
    %c0_i32_0 = arith.constant 0 : i32
    return %c0_i32, %arg0 : i32, i32
  }
}

</mosaic_0001>

<bundles_post_ra>
// kernel: value_function_forward.1
= control target key start
LH: loop header
LB: loop body
LE: loop exit
PB: predicated region body
PF: predicated region fallthrough
CT: control target
= control target key end

     0   :  { %s393_s0 = inlined_call_operand.vmem [shape: f32[8,16], index: 0, kind: input, shape index: {}]   ;;  %s394_s1 = inlined_call_operand.vmem [shape: f32[32,16], index: 1, kind: input, shape index: {}]   ;;  %s395_s2 = inlined_call_operand.vmem [shape: f32[32,1], index: 2, kind: input, shape index: {}]   ;;  %s396_s3 = inlined_call_operand.vmem [shape: f32[32,32], index: 3, kind: input, shape index: {}]   ;;  %s397_s4 = inlined_call_operand.vmem [shape: f32[32,1], index: 4, kind: input, shape index: {}]   ;;  %s398_s5 = inlined_call_operand.vmem [shape: f32[1,32], index: 5, kind: input, shape index: {}]   ;;  %s399_s6 = inlined_call_operand.<no memory space> [shape: f32[1,1], index: 6, kind: input, shape index: {}]   ;;  %s400_s7 = inlined_call_operand.hbm [shape: f32[1,8], index: 7, kind: output, shape index: {}]  }
   0x1   :  { %v12_v0 = vstv %s399_s6 }
   0x2   :  { %13 = vst [vmem:[#allocation2] sm:$0x1] %v12_v0 }
   0x3   :  { %v29_v1 = vld [vmem:[%s393_s0] sm:$0xff]  ;;  %vm58_vm0 = vcmask 130048   ;;  %v37_v2 = vld [vmem:[%s395_s2 + $0x18] sm:$0xff]  ;;  %v280_v4 = vmov 0   ;;  %v35_v5 = vld [vmem:[%s395_s2 + $0x8] sm:$0xff] }
   0x4   :  { %230 = vmatpush.xpose.msk.msra.mxu0 %vm58_vm0, %v29_v1  ;;  %v30_v3 = vld [vmem:[%s394_s1] sm:$0xff]  ;;  %252 = vset.pattern.permute.xlu1 %v280_v4  ;;  %v33_v6 = vld [vmem:[%s394_s1 + $0x18] sm:$0xff] }
   0x5   :  { %251 = vset.pattern.permute.xlu0 %v280_v4  ;;  %45 = vperm.xlu1 %252, %v35_v5  }
   0x6   :  { %55 = vperm.xlu0 %251, %v37_v2   ;;  %240 = vmatpush.xpose.msk.msra.mxu1 %vm58_vm0, %v29_v1 }
   0x7   :  { %14 = vsyncpa [#allocation4], 0  ;;  %231 = vmatmul.msk.f32.vlgmr.msra.gmra.mxu0 %vm58_vm0, %v30_v3  ;;  %253 = vset.pattern.permute.xlu2 %v280_v4  ;;  %v34_v7 = vld [vmem:[%s395_s2] sm:$0xff]  ;;  %v36_v8 = vld [vmem:[%s395_s2 + $0x10] sm:$0xff]  ;;  %vm135_vm1 = vcmask 261120   ;;  %s281_s6 = smov [#allocation3]  }
   0x8   :  { %v31_v9 = vld [vmem:[%s394_s1 + $0x8] sm:$0xff]  ;;  %v111_v10 = vld [vmem:[%s397_s4] sm:$0xff]  ;;  %v32_v12 = vld [vmem:[%s394_s1 + $0x10] sm:$0xff]  ;;  %s219_s0 = sshll.u32 %s281_s6, 4  ;;  %s221_s12 = sshll.u32 %s400_s7, 4  ;;  %vm212_vm2 = vcmask 57344   ;;  %s220_s0 = int_to_ptr.vmem [resolvable:$true] %s219_s0  ;;  %s222_s12 = int_to_ptr.hbm [resolvable:$true] %s221_s12 }
   0x9   :  { %234 = vmatmul.msk.f32.vlgmr.msra.gmra.mxu1 %vm58_vm0, %v33_v6  ;;  %v112_v11 = vld [vmem:[%s397_s4 + $0x8] sm:$0xff]  ;;  %v114_v17 = vld [vmem:[%s397_s4 + $0x18] sm:$0xff]  ;;  %v113_v21 = vld [vmem:[%s397_s4 + $0x10] sm:$0xff] }
   0xa   :  { %132 = vperm.xlu2 %253, %v114_v17   ;;  %v182_v27 = vld [vmem:[#allocation2] sm:$0x1]  ;;  %v108_v33 = vld [vmem:[%s396_s3 + $0x8] sm:$0xff]  ;;  %v109_v34 = vld [vmem:[%s396_s3 + $0x10] sm:$0xff] }
   0xb   :  { %v107_v32 = vld [vmem:[%s396_s3] sm:$0xff]  ;;  %v110_v35 = vld [vmem:[%s396_s3 + $0x18] sm:$0xff] }
   0xc   :  { %v181_v52 = vld [vmem:[%s398_s5] sm:$0x1] }
   0xd   :  { %40 = vperm.xlu1 %252, %v34_v7  }
   0xe   :  { %50 = vperm.xlu0 %251, %v36_v8  }
   0xf   :  { %232 = vmatmul.msk.f32.gmra.mxu0 %vm58_vm0, %v31_v9 }
  0x12   :  { %127 = vperm.xlu2 %253, %v113_v21  }
  0x15   :  { %117 = vperm.xlu1 %252, %v111_v10  }
  0x16   :  { %122 = vperm.xlu0 %251, %v112_v11  }
  0x17   :  { %233 = vmatmul.msk.f32.gmra.mxu0 %vm58_vm0, %v32_v12 }
  0x1a   :  { %185 = vperm.xlu2 %253, %v182_v27  }
  0x64   :  { %v133_v36 = vpop.permute.xlu2 %132 }
  0x6c   :  { %v128_v38 = vpop.permute.xlu2 %127 }
  0x74   :  { %v186_v53 = vpop.permute.xlu2 %185 }
  0x75   :  { %v188_v54 = vperm.slane %v186_v53, 0 }
  0x77   :  { %v46_v18 = vpop.permute.xlu1 %45 }
  0x78   :  { %v56_v14 = vpop.permute.xlu0 %55 }
  0x7f   :  { %v41_v22 = vpop.permute.xlu1 %40 }
  0x80   :  { %v51_v23 = vpop.permute.xlu0 %50 }
  0x84   :  { %v91_v13 = vpop.f32.mrf.mxu0 }
  0x85   :  { %v92_v28 = vadd.f32 %v91_v13, %v41_v22 }
  0x86   :  { %v100_v15 = vpop.f32.mrf.mxu1 }
  0x87   :  { %v101_v16 = vadd.f32 %v100_v15, %v56_v14  ;;  %v103_v31 = vmax.f32 %v92_v28, 0.0  ;;  %v118_v47 = vpop.permute.xlu1 %117 }
  0x88   :  { %v123_v43 = vpop.permute.xlu0 %122 }
  0x89   :  { %v106_v19 = vmax.f32 %v101_v16, 0.0 }
  0x8b   :  { %160 = vmatpush.msrb.mxu1 %v106_v19  ;;  %241 = vmatpush.msra.mxu2 %v106_v19 }
  0x8c   :  { %v94_v20 = vpop.f32.mrf.mxu0  ;;  %242 = vmatpush.msra.mxu3 %v106_v19 }
  0x8d   :  { %v95_v25 = vadd.f32 %v94_v20, %v46_v18 }
  0x8f   :  { %v104_v30 = vmax.f32 %v95_v25, 0.0 }
  0x94   :  { %v97_v24 = vpop.f32.mrf.mxu0 }
  0x95   :  { %v98_v26 = vadd.f32 %v97_v24, %v51_v23 }
  0x97   :  { %v105_v29 = vmax.f32 %v98_v26, 0.0 }
  0x99   :  { %161 = vmatpush.msrb.mxu1 %v105_v29  ;;  %243 = vmatpush.msra.mxu2 %v105_v29 }
  0x9a   :  { %244 = vmatpush.msra.mxu3 %v105_v29 }
  0x9b   :  { %162 = vmatpush.msrb.mxu1 %v104_v30  ;;  %245 = vmatpush.msra.mxu2 %v104_v30 }
  0x9c   :  { %246 = vmatpush.msra.mxu3 %v104_v30 }
  0x9d   :  { %163 = vmatpush.msrb.mxu1 %v103_v31  ;;  %247 = vmatpush.msra.mxu2 %v103_v31 }
  0x9e   :  { %248 = vmatpush.msra.mxu3 %v103_v31  ;;  %235 = vmatmul.msk.f32.vlgmr.msrb.gmra.mxu1 %vm135_vm1, %v107_v32 }
  0x9f   :  { %236 = vmatmul.msk.f32.vlgmr.msra.gmra.mxu2 %vm135_vm1, %v108_v33  ;;  %237 = vmatmul.msk.f32.vlgmr.msra.gmra.mxu3 %vm135_vm1, %v109_v34 }
  0xa7   :  { %238 = vmatmul.msk.f32.gmra.mxu3 %vm135_vm1, %v110_v35 }
 0x11b   :  { %v165_v44 = vpop.f32.mrf.mxu1 }
 0x11c   :  { %v166_v48 = vadd.f32 %v165_v44, %v118_v47 }
 0x11e   :  { %v177_v51 = vmax.f32 %v166_v48, 0.0 }
 0x122   :  { %v171_v37 = vpop.f32.mrf.mxu3  ;;  %v168_v39 = vpop.f32.mrf.mxu2 }
 0x123   :  { %v172_v41 = vadd.f32 %v171_v37, %v128_v38  ;;  %v169_v45 = vadd.f32 %v168_v39, %v123_v43 }
 0x125   :  { %v179_v49 = vmax.f32 %v172_v41, 0.0  ;;  %v178_v50 = vmax.f32 %v169_v45, 0.0 }
 0x12a   :  { %v174_v40 = vpop.f32.mrf.mxu3 }
 0x12b   :  { %v175_v42 = vadd.f32 %v174_v40, %v133_v36 }
 0x12d   :  { %v180_v46 = vmax.f32 %v175_v42, 0.0 }
 0x12f   :  { %204 = vmatpush.msrb.mxu2 %v180_v46 }
 0x131   :  { %205 = vmatpush.msrb.mxu2 %v179_v49 }
 0x133   :  { %206 = vmatpush.msrb.mxu2 %v178_v50 }
 0x135   :  { %207 = vmatpush.msrb.mxu2 %v177_v51 }
 0x136   :  { %239 = vmatmul.msk.f32.vlgmr.msrb.gmra.mxu2 %vm135_vm1, %v181_v52 }
 0x1b9   :  { %v209_v55 = vpop.f32.mrf.mxu2 }
 0x1ba   :  { %v210_v56 = vadd.f32 %v209_v55, %v188_v54 }
 0x1bc   :  { %213 = vst.msk [vmem:[#allocation3] sm:$0x1] %vm212_vm2, %v210_v56 }
 0x1bd   :  { %224 = dma.vmem_to_hbm [thread:$0]  %s220_s0, 16, %s222_s12, [#allocation4]  }
 0x1be   :  { %278 = dma.done.wait [#allocation4], 16  }
 0x1bf   :  { %279 = vsyncadd [#allocation4], 4294967280 }
 0x1c0   :  { %229 = vsyncpa [#allocation4], 1 }

</bundles_post_ra>
